<compile_context>
chip_gen: v7x
topology: tpu7x:2x2x1
jax: 0.10.0
libtpu: 0.0.40
codegen_flags: <defaults>
</compile_context>

<pallas_src>
import functools

import numpy as np

import jax
import jax.numpy as jnp
from jax.experimental import pallas as pl
from jax.experimental.pallas import tpu as pltpu


def _tap_table(H, W):
    """Static tap list + (2, P) column-validity masks for a 3x3 pad-1 conv.

    Returns:
      taps : tuple of (t, flat_shift, mask_row) for taps that can contribute;
             mask_row is None (no column mask needed), 0 (needs col >= 1) or
             1 (needs col <= W-2).
      masks: (2, P) float32 {0,1} column masks (row 0: col>=1, row 1: col<=W-2).
    """
    P = H * W
    rows, cols = np.arange(P) // W, np.arange(P) % W
    masks = np.stack([(cols >= 1), (cols <= W - 2)]).astype(np.float32)
    taps = []
    for ky in range(3):
        for kx in range(3):
            dy, dx = ky - 1, kx - 1
            valid = ((rows + dy >= 0) & (rows + dy < H) &
                     (cols + dx >= 0) & (cols + dx < W))
            if not valid.any():          # tap never contributes (H or W < 2)
                continue
            mask_row = None if dx == 0 else (0 if dx == -1 else 1)
            taps.append((ky * 3 + kx, dy * W + dx, mask_row))
    return tuple(taps), masks


def _conv_block_kernel(mask_ref, x_ref, w_ref, b_ref, o_ref, xpad_ref, *,
                       taps, pad, negative_slope):
    """Fused 3x3 conv (stride 1, pad 1) + bias + LeakyReLU for one batch block.

    mask_ref : (2, P)          f32 {0,1} column masks (resident)
    x_ref    : (NB, Cin, P)    input block, P = H*W flattened on lanes
    w_ref    : (9, Cout, Cin)  weights, tap order t = ky*3 + kx (resident)
    b_ref    : (Cout, 1)       bias (resident)
    o_ref    : (NB, Cout, P)   output block (lane-dense)
    xpad_ref : (Cin, pad+P+pad) VMEM staging slab with zero guards
    """
    NB, Cin, P = x_ref.shape
    Cout = w_ref.shape[1]

    # Zero the halo guards (tiny, lane-aligned full stores).  Done every grid
    # step so correctness does not depend on how the parallel grid is split
    # across TensorCores.
    xpad_ref[:, :pad] = jnp.zeros((Cin, pad), xpad_ref.dtype)
    xpad_ref[:, pad + P:] = jnp.zeros((Cin, pad), xpad_ref.dtype)

    def body(n, carry):
        # Stage image n once (aligned, full-lane store); every shifted tap is
        # then a single full-width load -- out-of-image rows read true zeros.
        xpad_ref[:, pad:pad + P] = x_ref[n]
        acc = jnp.zeros((Cout, P), jnp.float32)
        for (t, s, mask_row) in taps:                 # static 9-tap loop
            tap = xpad_ref[:, pad + s:pad + s + P]    # (Cin, P) full-lane load
            if mask_row is not None:                  # kill column wrap-around
                valid = mask_ref[mask_row:mask_row + 1, :] > 0.5   # (1, P) bool
                tap = jnp.where(valid, tap, jnp.zeros_like(tap))
            acc = acc + jnp.dot(w_ref[t], tap,
                                preferred_element_type=jnp.float32)
        y = acc + b_ref[...]                          # (Cout, 1) broadcast
        y = jnp.where(y >= 0, y, negative_slope * y)  # LeakyReLU(0.2)
        o_ref[n] = y.astype(o_ref.dtype)              # full-lane store
        return carry

    jax.lax.fori_loop(0, NB, body, 0)


def _vmem_config():
    """(vmem_limit_bytes, per-step block budget, tensorcores) -- defensive."""
    phys = 64 * 1024 * 1024            # conservative default (v7x physical)
    cores = 1
    try:
        info = pltpu.get_tpu_info()
        phys = int(getattr(info, "vmem_capacity_bytes", phys) or phys)
        cores = int(getattr(info, "num_cores",
                            getattr(info, "core_count", cores)) or cores)
    except Exception:
        pass
    # v5e/v6e (128 MiB phys) -> 96 MiB limit; v7x (64 MiB) -> 48 MiB.
    limit = min(100 * 1024 * 1024, max(32 * 1024 * 1024, (phys * 3) // 4))
    budget = max(8 * 1024 * 1024, limit // 3)
    return limit, budget, max(1, cores)


def _pick_batch_block(N, Cin, Cout, P, pad, budget_bytes, num_cores):
    """Images folded per grid step.

    Single-core parts: fold as much batch as the VMEM budget allows (fewest
    grid steps).  Multi-core parts: keep >= num_cores parallel grid steps so
    every TensorCore gets work.
    """
    per_img = 4 * P * 2 * (Cin + Cout)                  # double-buffered in/out
    working = 4 * (Cin * (P + 2 * pad) + P * (Cin + 3 * Cout))  # slab+acc+temps
    cap = max(1, int((budget_bytes - working) // max(per_img, 1)))
    if num_cores >= 2 and N >= num_cores:
        cap = min(cap, N // num_cores)
    cap = max(1, min(cap, N))
    nb = 1
    for d in range(1, cap + 1):                         # largest divisor of N
        if N % d == 0:
            nb = d
    return nb


@functools.partial(jax.jit, static_argnames=("negative_slope",))
def conv_block_forward(x_nchw, weight, bias, negative_slope=0.2):
    """ConvBlock forward.

    x_nchw: (N, Cin, H, W); weight: (Cout, Cin, 3, 3); bias: (Cout,).
    Returns (N, Cout, H, W).
    """
    N, Cin, H, W = x_nchw.shape
    Cout = weight.shape[0]
    P = H * W
    pad = ((W + 1 + 127) // 128) * 128        # lane-aligned halo, >= max |shift|

    # Glue is reshape-only (free): no NHWC transpose, no spatial padding pass.
    x_flat = x_nchw.reshape(N, Cin, P)
    w9 = jnp.transpose(weight, (2, 3, 0, 1)).reshape(9, Cout, Cin)  # [t, co, ci]
    b2 = bias.reshape(Cout, 1)

    taps, masks_np = _tap_table(H, W)
    masks = jnp.asarray(masks_np)             # (2, P) trace-time constant

    vmem_limit, budget, cores = _vmem_config()
    nb = _pick_batch_block(N, Cin, Cout, P, pad, budget, cores)
    grid = (N // nb,)

    kernel = functools.partial(_conv_block_kernel, taps=taps, pad=pad,
                               negative_slope=negative_slope)

    out_flat = pl.pallas_call(
        kernel,
        out_shape=jax.ShapeDtypeStruct((N, Cout, P), x_nchw.dtype),
        grid_spec=pltpu.PrefetchScalarGridSpec(
            num_scalar_prefetch=0,
            grid=grid,
            in_specs=[
                pl.BlockSpec((2, P), lambda i: (0, 0)),             # col masks
                pl.BlockSpec((nb, Cin, P), lambda i: (i, 0, 0)),    # input block
                pl.BlockSpec((9, Cout, Cin), lambda i: (0, 0, 0)),  # weights
                pl.BlockSpec((Cout, 1), lambda i: (0, 0)),          # bias
            ],
            out_specs=pl.BlockSpec((nb, Cout, P), lambda i: (i, 0, 0)),
            scratch_shapes=[pltpu.VMEM((Cin, P + 2 * pad), x_nchw.dtype)],
        ),
        compiler_params=pltpu.CompilerParams(
            dimension_semantics=("parallel",),
            vmem_limit_bytes=vmem_limit,
        ),
    )(masks, x_flat, w9, b2)

    return out_flat.reshape(N, Cout, H, W)


def _reference_forward(x_nchw, weight, bias, negative_slope=0.2):
    """Pure-JAX reference (lax conv) for validation."""
    out = jax.lax.conv_general_dilated(
        x_nchw, weight,
        window_strides=(1, 1),
        padding=((1, 1), (1, 1)),
        dimension_numbers=("NCHW", "OIHW", "NCHW"),
    )
    out = out + bias.reshape(1, -1, 1, 1)
    return jnp.where(out >= 0, out, negative_slope * out)


if __name__ == "__main__":
    # ConvBlock(ndims=2, in_channels=4, out_channels=8, stride=1)
    N, Cin, H, W = 2, 4, 16, 16
    Cout = 8

    key = jax.random.PRNGKey(0)
    kx_, kw_, kb_ = jax.random.split(key, 3)

    x = jax.random.normal(kx_, (N, Cin, H, W), dtype=jnp.float32)
    # Deterministic synthetic parameters (shapes match nn.Conv2d(Cin, Cout, 3, 1, 1)).
    fan_in = Cin * 3 * 3
    weight = jax.random.normal(kw_, (Cout, Cin, 3, 3), dtype=jnp.float32) / jnp.sqrt(fan_in)
    bias = jax.random.normal(kb_, (Cout,), dtype=jnp.float32) * 0.01

    out = conv_block_forward(x, weight, bias)
    out = jax.block_until_ready(out)

    ref = _reference_forward(x, weight, bias)
    assert out.shape == (N, Cout, H, W), out.shape
    assert jnp.allclose(out, ref, atol=1e-4, rtol=1e-4), (
        float(jnp.max(jnp.abs(out - ref))))

    print("KERNEL_OK")
</pallas_src>

<mosaic_0001>
module attributes {stable_mosaic.version = 11 : i64} {
  func.func @_conv_block_kernel(%arg0: i32, %arg1: memref<2x256xf32, #tpu.memory_space<vmem>>, %arg2: memref<2x4x256xf32, #tpu.memory_space<vmem>>, %arg3: memref<9x8x4xf32, #tpu.memory_space<vmem>>, %arg4: memref<8x1xf32, #tpu.memory_space<vmem>>, %arg5: memref<2x8x256xf32, #tpu.memory_space<vmem>>, %arg6: memref<4x512xf32, #tpu.memory_space<vmem>>) attributes {dimension_semantics = [#tpu.dimension_semantics<parallel>], iteration_bounds = array<i64: 1>, scalar_prefetch = 0 : i64, scratch_operands = 1 : i64, tpu.core_type = #tpu.core_type<tc>, window_params = [{pipeline_mode = #tpu.pipeline_mode<synchronous>, transform_indices = @transform_0, window_bounds = array<i64: 2, 256>}, {transform_indices = @transform_1, window_bounds = array<i64: 2, 4, 256>}, {pipeline_mode = #tpu.pipeline_mode<synchronous>, transform_indices = @transform_2, window_bounds = array<i64: 9, 8, 4>}, {pipeline_mode = #tpu.pipeline_mode<synchronous>, transform_indices = @transform_3, window_bounds = array<i64: 8, 1>}, {transform_indices = @transform_4, window_bounds = array<i64: 2, 8, 256>}]} {
    %cst = arith.constant 0.000000e+00 : f32
    %0 = vector.broadcast %cst : f32 to vector<4x128xf32>
    %c0 = arith.constant 0 : index
    %c0_0 = arith.constant 0 : index
    %1 = vector.load %arg6[%c0, %c0_0] : memref<4x512xf32, #tpu.memory_space<vmem>>, vector<4x128xf32>
    tpu.vector_store %arg6[%c0, %c0_0], %0 {strides = array<i32>} : memref<4x512xf32, #tpu.memory_space<vmem>>, vector<4x128xf32>,
    %cst_1 = arith.constant 0.000000e+00 : f32
    %2 = vector.broadcast %cst_1 : f32 to vector<4x128xf32>
    %c0_2 = arith.constant 0 : index
    %c384 = arith.constant 384 : index
    %3 = vector.load %arg6[%c0_2, %c384] : memref<4x512xf32, #tpu.memory_space<vmem>>, vector<4x128xf32>
    tpu.vector_store %arg6[%c0_2, %c384], %2 {strides = array<i32>} : memref<4x512xf32, #tpu.memory_space<vmem>>, vector<4x128xf32>,
    %c0_i32 = arith.constant 0 : i32
    %c2_i32 = arith.constant 2 : i32
    %4 = arith.addi %c0_i32, %c2_i32 : i32
    %c1_i32 = arith.constant 1 : i32
    scf.for %arg7 = %c0_i32 to %4 step %c1_i32  : i32 {
      %5 = arith.index_cast %arg7 : i32 to index
      %c0_4 = arith.constant 0 : index
      %c0_5 = arith.constant 0 : index
      %6 = vector.load %arg2[%5, %c0_4, %c0_5] : memref<2x4x256xf32, #tpu.memory_space<vmem>>, vector<1x4x256xf32>
      %7 = vector.shape_cast %6 : vector<1x4x256xf32> to vector<4x256xf32>
      %c0_6 = arith.constant 0 : index
      %c128 = arith.constant 128 : index
      %8 = vector.load %arg6[%c0_6, %c128] : memref<4x512xf32, #tpu.memory_space<vmem>>, vector<4x256xf32>
      tpu.vector_store %arg6[%c0_6, %c128], %7 {strides = array<i32>} : memref<4x512xf32, #tpu.memory_space<vmem>>, vector<4x256xf32>,
      %cst_7 = arith.constant 0.000000e+00 : f32
      %9 = vector.broadcast %cst_7 : f32 to vector<8x256xf32>
      %c0_8 = arith.constant 0 : index
      %c111 = arith.constant 111 : index
      %10 = vector.load %arg6[%c0_8, %c111] : memref<4x512xf32, #tpu.memory_space<vmem>>, vector<4x256xf32>
      %c0_9 = arith.constant 0 : index
      %c0_10 = arith.constant 0 : index
      %11 = vector.load %arg1[%c0_9, %c0_10] : memref<2x256xf32, #tpu.memory_space<vmem>>, vector<1x256xf32>
      %cst_11 = arith.constant 5.000000e-01 : f32
      %12 = vector.broadcast %cst_11 : f32 to vector<1x256xf32>
      %13 = arith.cmpf ogt, %11, %12 : vector<1x256xf32>
      %cst_12 = arith.constant 0.000000e+00 : f32
      %14 = vector.broadcast %cst_12 : f32 to vector<4x256xf32>
      %15 = vector.shape_cast %13 : vector<1x256xi1> to vector<1x256xi1>
      %16 = vector.broadcast %15 : vector<1x256xi1> to vector<4x256xi1>
      %17 = arith.select %16, %10, %14 : vector<4x256xi1>, vector<4x256xf32>
      %c0_13 = arith.constant 0 : index
      %c0_14 = arith.constant 0 : index
      %c0_15 = arith.constant 0 : index
      %18 = vector.load %arg3[%c0_13, %c0_14, %c0_15] : memref<9x8x4xf32, #tpu.memory_space<vmem>>, vector<1x8x4xf32>
      %19 = vector.shape_cast %18 : vector<1x8x4xf32> to vector<8x4xf32>
      %cst_16 = arith.constant dense<0.000000e+00> : vector<8x256xf32>
      %20 = tpu.matmul %19, %17, %cst_16 {dimension_numbers = #tpu.dot_dimension_numbers<[1], [0], [0], [1], [0, 0, 1, 1], [], []>} : vector<8x4xf32>, vector<4x256xf32>, vector<8x256xf32> -> vector<8x256xf32>
      %21 = arith.addf %9, %20 : vector<8x256xf32>
      %c0_17 = arith.constant 0 : index
      %c112 = arith.constant 112 : index
      %22 = vector.load %arg6[%c0_17, %c112] : memref<4x512xf32, #tpu.memory_space<vmem>>, vector<4x256xf32>
      %c1 = arith.constant 1 : index
      %c0_18 = arith.constant 0 : index
      %c0_19 = arith.constant 0 : index
      %23 = vector.load %arg3[%c1, %c0_18, %c0_19] : memref<9x8x4xf32, #tpu.memory_space<vmem>>, vector<1x8x4xf32>
      %24 = vector.shape_cast %23 : vector<1x8x4xf32> to vector<8x4xf32>
      %cst_20 = arith.constant dense<0.000000e+00> : vector<8x256xf32>
      %25 = tpu.matmul %24, %22, %cst_20 {dimension_numbers = #tpu.dot_dimension_numbers<[1], [0], [0], [1], [0, 0, 1, 1], [], []>} : vector<8x4xf32>, vector<4x256xf32>, vector<8x256xf32> -> vector<8x256xf32>
      %26 = arith.addf %21, %25 : vector<8x256xf32>
      %c0_21 = arith.constant 0 : index
      %c113 = arith.constant 113 : index
      %27 = vector.load %arg6[%c0_21, %c113] : memref<4x512xf32, #tpu.memory_space<vmem>>, vector<4x256xf32>
      %c1_22 = arith.constant 1 : index
      %c0_23 = arith.constant 0 : index
      %28 = vector.load %arg1[%c1_22, %c0_23] : memref<2x256xf32, #tpu.memory_space<vmem>>, vector<1x256xf32>
      %cst_24 = arith.constant 5.000000e-01 : f32
      %29 = vector.broadcast %cst_24 : f32 to vector<1x256xf32>
      %30 = arith.cmpf ogt, %28, %29 : vector<1x256xf32>
      %cst_25 = arith.constant 0.000000e+00 : f32
      %31 = vector.broadcast %cst_25 : f32 to vector<4x256xf32>
      %32 = vector.shape_cast %30 : vector<1x256xi1> to vector<1x256xi1>
      %33 = vector.broadcast %32 : vector<1x256xi1> to vector<4x256xi1>
      %34 = arith.select %33, %27, %31 : vector<4x256xi1>, vector<4x256xf32>
      %c2 = arith.constant 2 : index
      %c0_26 = arith.constant 0 : index
      %c0_27 = arith.constant 0 : index
      %35 = vector.load %arg3[%c2, %c0_26, %c0_27] : memref<9x8x4xf32, #tpu.memory_space<vmem>>, vector<1x8x4xf32>
      %36 = vector.shape_cast %35 : vector<1x8x4xf32> to vector<8x4xf32>
      %cst_28 = arith.constant dense<0.000000e+00> : vector<8x256xf32>
      %37 = tpu.matmul %36, %34, %cst_28 {dimension_numbers = #tpu.dot_dimension_numbers<[1], [0], [0], [1], [0, 0, 1, 1], [], []>} : vector<8x4xf32>, vector<4x256xf32>, vector<8x256xf32> -> vector<8x256xf32>
      %38 = arith.addf %26, %37 : vector<8x256xf32>
      %c0_29 = arith.constant 0 : index
      %c127 = arith.constant 127 : index
      %39 = vector.load %arg6[%c0_29, %c127] : memref<4x512xf32, #tpu.memory_space<vmem>>, vector<4x256xf32>
      %c0_30 = arith.constant 0 : index
      %c0_31 = arith.constant 0 : index
      %40 = vector.load %arg1[%c0_30, %c0_31] : memref<2x256xf32, #tpu.memory_space<vmem>>, vector<1x256xf32>
      %cst_32 = arith.constant 5.000000e-01 : f32
      %41 = vector.broadcast %cst_32 : f32 to vector<1x256xf32>
      %42 = arith.cmpf ogt, %40, %41 : vector<1x256xf32>
      %cst_33 = arith.constant 0.000000e+00 : f32
      %43 = vector.broadcast %cst_33 : f32 to vector<4x256xf32>
      %44 = vector.shape_cast %42 : vector<1x256xi1> to vector<1x256xi1>
      %45 = vector.broadcast %44 : vector<1x256xi1> to vector<4x256xi1>
      %46 = arith.select %45, %39, %43 : vector<4x256xi1>, vector<4x256xf32>
      %c3 = arith.constant 3 : index
      %c0_34 = arith.constant 0 : index
      %c0_35 = arith.constant 0 : index
      %47 = vector.load %arg3[%c3, %c0_34, %c0_35] : memref<9x8x4xf32, #tpu.memory_space<vmem>>, vector<1x8x4xf32>
      %48 = vector.shape_cast %47 : vector<1x8x4xf32> to vector<8x4xf32>
      %cst_36 = arith.constant dense<0.000000e+00> : vector<8x256xf32>
      %49 = tpu.matmul %48, %46, %cst_36 {dimension_numbers = #tpu.dot_dimension_numbers<[1], [0], [0], [1], [0, 0, 1, 1], [], []>} : vector<8x4xf32>, vector<4x256xf32>, vector<8x256xf32> -> vector<8x256xf32>
      %50 = arith.addf %38, %49 : vector<8x256xf32>
      %c0_37 = arith.constant 0 : index
      %c128_38 = arith.constant 128 : index
      %51 = vector.load %arg6[%c0_37, %c128_38] : memref<4x512xf32, #tpu.memory_space<vmem>>, vector<4x256xf32>
      %c4 = arith.constant 4 : index
      %c0_39 = arith.constant 0 : index
      %c0_40 = arith.constant 0 : index
      %52 = vector.load %arg3[%c4, %c0_39, %c0_40] : memref<9x8x4xf32, #tpu.memory_space<vmem>>, vector<1x8x4xf32>
      %53 = vector.shape_cast %52 : vector<1x8x4xf32> to vector<8x4xf32>
      %cst_41 = arith.constant dense<0.000000e+00> : vector<8x256xf32>
      %54 = tpu.matmul %53, %51, %cst_41 {dimension_numbers = #tpu.dot_dimension_numbers<[1], [0], [0], [1], [0, 0, 1, 1], [], []>} : vector<8x4xf32>, vector<4x256xf32>, vector<8x256xf32> -> vector<8x256xf32>
      %55 = arith.addf %50, %54 : vector<8x256xf32>
      %c0_42 = arith.constant 0 : index
      %c129 = arith.constant 129 : index
      %56 = vector.load %arg6[%c0_42, %c129] : memref<4x512xf32, #tpu.memory_space<vmem>>, vector<4x256xf32>
      %c1_43 = arith.constant 1 : index
      %c0_44 = arith.constant 0 : index
      %57 = vector.load %arg1[%c1_43, %c0_44] : memref<2x256xf32, #tpu.memory_space<vmem>>, vector<1x256xf32>
      %cst_45 = arith.constant 5.000000e-01 : f32
      %58 = vector.broadcast %cst_45 : f32 to vector<1x256xf32>
      %59 = arith.cmpf ogt, %57, %58 : vector<1x256xf32>
      %cst_46 = arith.constant 0.000000e+00 : f32
      %60 = vector.broadcast %cst_46 : f32 to vector<4x256xf32>
      %61 = vector.shape_cast %59 : vector<1x256xi1> to vector<1x256xi1>
      %62 = vector.broadcast %61 : vector<1x256xi1> to vector<4x256xi1>
      %63 = arith.select %62, %56, %60 : vector<4x256xi1>, vector<4x256xf32>
      %c5 = arith.constant 5 : index
      %c0_47 = arith.constant 0 : index
      %c0_48 = arith.constant 0 : index
      %64 = vector.load %arg3[%c5, %c0_47, %c0_48] : memref<9x8x4xf32, #tpu.memory_space<vmem>>, vector<1x8x4xf32>
      %65 = vector.shape_cast %64 : vector<1x8x4xf32> to vector<8x4xf32>
      %cst_49 = arith.constant dense<0.000000e+00> : vector<8x256xf32>
      %66 = tpu.matmul %65, %63, %cst_49 {dimension_numbers = #tpu.dot_dimension_numbers<[1], [0], [0], [1], [0, 0, 1, 1], [], []>} : vector<8x4xf32>, vector<4x256xf32>, vector<8x256xf32> -> vector<8x256xf32>
      %67 = arith.addf %55, %66 : vector<8x256xf32>
      %c0_50 = arith.constant 0 : index
      %c143 = arith.constant 143 : index
      %68 = vector.load %arg6[%c0_50, %c143] : memref<4x512xf32, #tpu.memory_space<vmem>>, vector<4x256xf32>
      %c0_51 = arith.constant 0 : index
      %c0_52 = arith.constant 0 : index
      %69 = vector.load %arg1[%c0_51, %c0_52] : memref<2x256xf32, #tpu.memory_space<vmem>>, vector<1x256xf32>
      %cst_53 = arith.constant 5.000000e-01 : f32
      %70 = vector.broadcast %cst_53 : f32 to vector<1x256xf32>
      %71 = arith.cmpf ogt, %69, %70 : vector<1x256xf32>
      %cst_54 = arith.constant 0.000000e+00 : f32
      %72 = vector.broadcast %cst_54 : f32 to vector<4x256xf32>
      %73 = vector.shape_cast %71 : vector<1x256xi1> to vector<1x256xi1>
      %74 = vector.broadcast %73 : vector<1x256xi1> to vector<4x256xi1>
      %75 = arith.select %74, %68, %72 : vector<4x256xi1>, vector<4x256xf32>
      %c6 = arith.constant 6 : index
      %c0_55 = arith.constant 0 : index
      %c0_56 = arith.constant 0 : index
      %76 = vector.load %arg3[%c6, %c0_55, %c0_56] : memref<9x8x4xf32, #tpu.memory_space<vmem>>, vector<1x8x4xf32>
      %77 = vector.shape_cast %76 : vector<1x8x4xf32> to vector<8x4xf32>
      %cst_57 = arith.constant dense<0.000000e+00> : vector<8x256xf32>
      %78 = tpu.matmul %77, %75, %cst_57 {dimension_numbers = #tpu.dot_dimension_numbers<[1], [0], [0], [1], [0, 0, 1, 1], [], []>} : vector<8x4xf32>, vector<4x256xf32>, vector<8x256xf32> -> vector<8x256xf32>
      %79 = arith.addf %67, %78 : vector<8x256xf32>
      %c0_58 = arith.constant 0 : index
      %c144 = arith.constant 144 : index
      %80 = vector.load %arg6[%c0_58, %c144] : memref<4x512xf32, #tpu.memory_space<vmem>>, vector<4x256xf32>
      %c7 = arith.constant 7 : index
      %c0_59 = arith.constant 0 : index
      %c0_60 = arith.constant 0 : index
      %81 = vector.load %arg3[%c7, %c0_59, %c0_60] : memref<9x8x4xf32, #tpu.memory_space<vmem>>, vector<1x8x4xf32>
      %82 = vector.shape_cast %81 : vector<1x8x4xf32> to vector<8x4xf32>
      %cst_61 = arith.constant dense<0.000000e+00> : vector<8x256xf32>
      %83 = tpu.matmul %82, %80, %cst_61 {dimension_numbers = #tpu.dot_dimension_numbers<[1], [0], [0], [1], [0, 0, 1, 1], [], []>} : vector<8x4xf32>, vector<4x256xf32>, vector<8x256xf32> -> vector<8x256xf32>
      %84 = arith.addf %79, %83 : vector<8x256xf32>
      %c0_62 = arith.constant 0 : index
      %c145 = arith.constant 145 : index
      %85 = vector.load %arg6[%c0_62, %c145] : memref<4x512xf32, #tpu.memory_space<vmem>>, vector<4x256xf32>
      %c1_63 = arith.constant 1 : index
      %c0_64 = arith.constant 0 : index
      %86 = vector.load %arg1[%c1_63, %c0_64] : memref<2x256xf32, #tpu.memory_space<vmem>>, vector<1x256xf32>
      %cst_65 = arith.constant 5.000000e-01 : f32
      %87 = vector.broadcast %cst_65 : f32 to vector<1x256xf32>
      %88 = arith.cmpf ogt, %86, %87 : vector<1x256xf32>
      %cst_66 = arith.constant 0.000000e+00 : f32
      %89 = vector.broadcast %cst_66 : f32 to vector<4x256xf32>
      %90 = vector.shape_cast %88 : vector<1x256xi1> to vector<1x256xi1>
      %91 = vector.broadcast %90 : vector<1x256xi1> to vector<4x256xi1>
      %92 = arith.select %91, %85, %89 : vector<4x256xi1>, vector<4x256xf32>
      %c8 = arith.constant 8 : index
      %c0_67 = arith.constant 0 : index
      %c0_68 = arith.constant 0 : index
      %93 = vector.load %arg3[%c8, %c0_67, %c0_68] : memref<9x8x4xf32, #tpu.memory_space<vmem>>, vector<1x8x4xf32>
      %94 = vector.shape_cast %93 : vector<1x8x4xf32> to vector<8x4xf32>
      %cst_69 = arith.constant dense<0.000000e+00> : vector<8x256xf32>
      %95 = tpu.matmul %94, %92, %cst_69 {dimension_numbers = #tpu.dot_dimension_numbers<[1], [0], [0], [1], [0, 0, 1, 1], [], []>} : vector<8x4xf32>, vector<4x256xf32>, vector<8x256xf32> -> vector<8x256xf32>
      %96 = arith.addf %84, %95 : vector<8x256xf32>
      %c0_70 = arith.constant 0 : index
      %c0_71 = arith.constant 0 : index
      %97 = vector.load %arg4[%c0_70, %c0_71] : memref<8x1xf32, #tpu.memory_space<vmem>>, vector<8x1xf32>
      %98 = vector.broadcast %97 : vector<8x1xf32> to vector<8x256xf32>
      %99 = arith.addf %96, %98 : vector<8x256xf32>
      %cst_72 = arith.constant 0.000000e+00 : f32
      %100 = vector.broadcast %cst_72 : f32 to vector<8x256xf32>
      %101 = arith.cmpf oge, %99, %100 : vector<8x256xf32>
      %cst_73 = arith.constant 2.000000e-01 : f32
      %102 = vector.broadcast %cst_73 : f32 to vector<8x256xf32>
      %103 = arith.mulf %102, %99 : vector<8x256xf32>
      %104 = arith.select %101, %99, %103 : vector<8x256xi1>, vector<8x256xf32>
      %105 = arith.index_cast %arg7 : i32 to index
      %c0_74 = arith.constant 0 : index
      %c0_75 = arith.constant 0 : index
      %106 = vector.load %arg5[%105, %c0_74, %c0_75] : memref<2x8x256xf32, #tpu.memory_space<vmem>>, vector<1x8x256xf32>
      %107 = vector.shape_cast %106 : vector<1x8x256xf32> to vector<8x256xf32>
      %108 = vector.shape_cast %104 : vector<8x256xf32> to vector<1x8x256xf32>
      tpu.vector_store %arg5[%105, %c0_74, %c0_75], %108 {strides = array<i32>} : memref<2x8x256xf32, #tpu.memory_space<vmem>>, vector<1x8x256xf32>,
    }
    %c2_i32_3 = arith.constant 2 : i32
    return
  }
  func.func @transform_0(%arg0: i32) -> (i32, i32) {
    %c0_i32 = arith.constant 0 : i32
    %c0_i32_0 = arith.constant 0 : i32
    %c0_i32_1 = arith.constant 0 : i32
    return %c0_i32, %c0_i32_0 : i32, i32
  }
  func.func @transform_1(%arg0: i32) -> (i32, i32, i32) {
    %c0_i32 = arith.constant 0 : i32
    %c0_i32_0 = arith.constant 0 : i32
    %c0_i32_1 = arith.constant 0 : i32
    return %arg0, %c0_i32, %c0_i32_0 : i32, i32, i32
  }
  func.func @transform_2(%arg0: i32) -> (i32, i32, i32) {
    %c0_i32 = arith.constant 0 : i32
    %c0_i32_0 = arith.constant 0 : i32
    %c0_i32_1 = arith.constant 0 : i32
    %c0_i32_2 = arith.constant 0 : i32
    return %c0_i32, %c0_i32_0, %c0_i32_1 : i32, i32, i32
  }
  func.func @transform_3(%arg0: i32) -> (i32, i32) {
    %c0_i32 = arith.constant 0 : i32
    %c0_i32_0 = arith.constant 0 : i32
    %c0_i32_1 = arith.constant 0 : i32
    return %c0_i32, %c0_i32_0 : i32, i32
  }
  func.func @transform_4(%arg0: i32) -> (i32, i32, i32) {
    %c0_i32 = arith.constant 0 : i32
    %c0_i32_0 = arith.constant 0 : i32
    %c0_i32_1 = arith.constant 0 : i32
    return %arg0, %c0_i32, %c0_i32_0 : i32, i32, i32
  }
}

</mosaic_0001>

<bundles_post_ra>
// kernel: conv_block_forward.1
= control target key start
LH: loop header
LB: loop body
LE: loop exit
PB: predicated region body
PF: predicated region fallthrough
CT: control target
= control target key end

     0   :  { %v1056_v0 = vmov 0.0   ;;  %s1092_s15 = smov 0   ;;  %s1221_s0 = inlined_call_operand.vmem [shape: f32[2,256], index: 0, kind: input, shape index: {}]   ;;  %s1222_s1 = inlined_call_operand.vmem [shape: f32[2,4,256], index: 1, kind: input, shape index: {}]   ;;  %s1223_s2 = inlined_call_operand.vmem [shape: f32[9,8,4], index: 2, kind: input, shape index: {}]   ;;  %s1224_s3 = inlined_call_operand.vmem [shape: f32[8,1], index: 3, kind: input, shape index: {}]   ;;  %s1225_s4 = inlined_call_operand.vmem [shape: f32[2,8,256], index: 4, kind: output, shape index: {}]  }
   0x1   :  { %17 = vst [vmem:[#allocation2] sm:$0xf] %v1056_v0  ;;  %18 = vst [vmem:[#allocation2 + $0xc] sm:$0xf] %v1056_v0 }
   0x2 LB: > { %s1057_s16 = smov 127   ;;  %s1008_s17 = sshll.u32 %s1054_s15, 3  ;;  %v1058_v2 = vmov 0   ;;  %vm77_vm0 = vcmask 1043456   ;;  %v1059_v4 = vmov 0.0   ;;  %vm73_vm1 = vcmask 31744   ;;  %s1054_s15 = sphi %s1092_s15, %s24_s15  }
   0x3   : > { %1045 = vset.pattern.permute.xlu0 %v1058_v2  ;;  %s27_s20 = scalar_lea.vmem %s1222_s1, %s1008_s17  ;;  %527 = vmatprep.mubr.f32.mxu0 %v1059_v4  ;;  %v987_v6 = vld [vmem:[%s1223_s2 + $0x20] sm:$0xff]  ;;  %s1060_s23 = smov 16   ;;  %v35_v16 = vlaneseq  ;;  %vm547_vm3 = vcmask 1039360   ;;  %v991_v31 = vld [vmem:[%s1223_s2 + $0x28] sm:$0xff]  ;;  %vm54_vm7 = vcmask 138240   ;;  %vm70_vm8 = vcmask 130048  }
   0x4   : > { %v28_v3 = vld [vmem:[%s27_s20] sm:$0xff]  ;;  %146 = vmatprep.mubr.f32.mxu1 %v1059_v4  ;;  %s1061_s24 = smov 17   ;;  %s1062_s25 = smov 113   ;;  %v971_v47 = vld [vmem:[%s1223_s2 + $0x8] sm:$0xff]  ;;  %vm649_vm11 = vcmask 924672   ;;  %vm258_vm12 = vcmask 121856  }
   0x5   : > { %29 = vst [vmem:[#allocation2 + $0x4] sm:$0xff] %v28_v3  ;;  %v540_v5 = vcombine.high %v28_v3, %v28_v3  ;;  %s1063_s26 = smov 15   ;;  %s1064_s27 = smov 112   ;;  %v938_v14 = vld [vmem:[%s1224_s3] sm:$0xff]  ;;  %v36_v18 = vshrl.u32 %v35_v16, 7  ;;  %v995_v58 = vld [vmem:[%s1223_s2 + $0x30] sm:$0xff] }
   0x6   : > { %s1065_s28 = smov 1   ;;  %s1066_s29 = smov 111   ;;  %v978_v17 = vld [vmem:[%s1221_s0 + $0x1] ss:$2 sm:$0x3]  ;;  %vm753_vm13 = vcmask 916480  }
   0x7   : > { %988 = vmatprep.subr.msk.mxu0 %vm77_vm0, %v540_v5  ;;  %vm237_vm2 = vcmp.gt.f32.partialorder %v978_v17, 0.5  ;;  %v37_v19 = vsub.s32 0, %v36_v18  ;;  %v41_v20 = vsub.s32 1, %v36_v18  ;;  %v32_v32 = vld [vmem:[%s1221_s0] ss:$2 sm:$0x3] }
   0x8   : > { %v537_v1 = vld [vmem:[#allocation2 + $0xc] sm:$0xf]  ;;  %989 = vmatpush1.msk.msra.mxu0 %vm77_vm0, %v28_v3  ;;  %v238_v22 = vsel %vm237_vm2, 1, %v1058_v2  ;;  %vm33_vm6 = vcmp.gt.f32.partialorder %v32_v32, 0.5  ;;  %v61_v57 = vld [vmem:[%s1223_s2] sm:$0xff]  ;;  %vm360_vm14 = vcmask 7168  }
   0x9   : > { %545 = vrot.lane.b32.xlu0 %v537_v1, %s1057_s16  ;;  %990 = vmatmul.mubr.msk.f32.vlgmr.msra.gmra.mrb[0].mxu0 %vm73_vm1, %v987_v6  ;;  %v639_v10 = vld [vmem:[#allocation2 + $0xc] sm:$0xf]  ;;  %v1118_v23 = vrot.slane %v238_v22, %v37_v19  ;;  %v1120_v24 = vrot.slane %v238_v22, %v41_v20  ;;  %v34_v36 = vsel %vm33_vm6, 1, %v1058_v2  ;;  %v979_v6 = vld [vmem:[%s1223_s2 + $0x10] sm:$0xff]  ;;  %vm847_vm15 = vcmask 908288   ;;  %v983_v17 = vld [vmem:[%s1223_s2 + $0x18] sm:$0xff] }
   0xa   : > { %629 = vmatprep.mubr.f32.mxu0 %v1059_v4  ;;  %v741_v11 = vld [vmem:[#allocation2 + $0xc] sm:$0xf]  ;;  %v1139_v39 = vrot.slane %v34_v36, %v41_v20  ;;  %v1141_v40 = vrot.slane %v34_v36, %v37_v19  ;;  %v1003_v22 = vld [vmem:[%s1223_s2 + $0x40] sm:$0xff] }
   0xb   : > { %v837_v15 = vld [vmem:[#allocation2 + $0xc] sm:$0xf]  ;;  %vm247_vm4 = vcmp.eq.s32.totalorder %v1118_v23, 1  ;;  %vm248_vm5 = vcmp.eq.s32.totalorder %v1120_v24, 1 }
   0xc   : > { %v31_v7 = vld [vmem:[#allocation2 + $0x8] sm:$0xf]  ;;  %v30_v8 = vld [vmem:[#allocation2] sm:$0xff]  ;;  %vm44_vm9 = vcmp.eq.s32.totalorder %v1139_v39, 1  ;;  %vm43_vm10 = vcmp.eq.s32.totalorder %v1141_v40, 1 }
   0xd   : > { %541 = vrot.lane.b32.xlu0 %v28_v3, %s1057_s16  ;;  %68 = vrot.lane.b32.xlu1 %v31_v7, %s1060_s23  ;;  %v47_v9 = vcombine.high %v30_v8, %v30_v8  ;;  %v234_v12 = vld [vmem:[#allocation2 + $0x8] sm:$0xf] }
   0xe   : > { %v350_v13 = vld [vmem:[#allocation2 + $0x8] sm:$0xf] }
  0x11   : > { %543 = vrot.lane.b32.xlu0 %v540_v5, %s1057_s16  ;;  %64 = vrot.lane.b32.xlu1 %v30_v8, %s1060_s23 }
  0x15   : > { %50 = vrot.lane.b32.xlu0 %v47_v9, %s1061_s24  ;;  %52 = vrot.lane.b32.xlu1 %v31_v7, %s1061_s24 }
  0x19   : > { %645 = vrot.lane.b32.xlu0 %v540_v5, %s1062_s25  ;;  %66 = vrot.lane.b32.xlu1 %v47_v9, %s1060_s23 }
  0x1d   : > { %48 = vrot.lane.b32.xlu0 %v30_v8, %s1061_s24  ;;  %647 = vrot.lane.b32.xlu1 %v639_v10, %s1062_s25 }
  0x21   : > { %254 = vrot.lane.b32.xlu0 %v47_v9, %s1063_s26  ;;  %643 = vrot.lane.b32.xlu1 %v28_v3, %s1062_s25 }
  0x25   : > { %252 = vrot.lane.b32.xlu0 %v30_v8, %s1063_s26  ;;  %256 = vrot.lane.b32.xlu1 %v234_v12, %s1063_s26 }
  0x29   : > { %751 = vrot.lane.b32.xlu0 %v741_v11, %s1064_s27  ;;  %749 = vrot.lane.b32.xlu1 %v540_v5, %s1064_s27 }
  0x2d   : > { %356 = vrot.lane.b32.xlu0 %v47_v9, %s1065_s28  ;;  %747 = vrot.lane.b32.xlu1 %v28_v3, %s1064_s27  ;;  %v999_v9 = vld [vmem:[%s1223_s2 + $0x38] sm:$0xff]  ;;  %s1009_s27 = sshll.u32 %s1054_s15, 4  ;;  %s24_s15 = sadd.s32 1, %s1054_s15  }
  0x2e   : > { %s953_s30 = scalar_lea.vmem %s1225_s4, %s1009_s27  ;;  %p21_p0 = scmp.ge.s32.totalorder %s24_s15, 2  }
  0x31   : > { %843 = vrot.lane.b32.xlu0 %v540_v5, %s1066_s29  ;;  %358 = vrot.lane.b32.xlu1 %v350_v13, %s1065_s28 }
  0x35   : > { %354 = vrot.lane.b32.xlu0 %v30_v8, %s1065_s28  ;;  %845 = vrot.lane.b32.xlu1 %v837_v15, %s1066_s29 }
  0x39   : > { %941 = vperm.xlu0 %1045, %v938_v14   ;;  %841 = vrot.lane.b32.xlu1 %v28_v3, %s1066_s29 }
  0x7b   : > { %v546_v21 = vpop.permute.xlu0 %545 }
  0x7f   : > { %v542_v25 = vpop.permute.xlu0 %541  ;;  %v69_v33 = vpop.permute.xlu1 %68 }
  0x83   : > { %v544_v26 = vpop.permute.xlu0 %543  ;;  %v65_v35 = vpop.permute.xlu1 %64 }
  0x84   : > { %v548_v27 = vsel %vm547_vm3, %v542_v25, %v544_v26  ;;  %v549_v28 = vsel %vm547_vm3, %v544_v26, %v546_v21 }
  0x85   : > { %v552_v29 = vsel %vm247_vm4, %v548_v27, 0.0  ;;  %v553_v30 = vsel %vm248_vm5, %v549_v28, 0.0 }
  0x86   : > { %992 = vmatprep.subr.msk.mxu0 %vm77_vm0, %v553_v30 }
  0x87   : > { %993 = vmatpush1.msk.msra.mxu0 %vm77_vm0, %v552_v29  ;;  %v51_v34 = vpop.permute.xlu0 %50  ;;  %v53_v38 = vpop.permute.xlu1 %52 }
  0x88   : > { %994 = vmatmul.mubr.msk.f32.vlgmr.msra.gmra.mrb[0].mxu0 %vm73_vm1, %v991_v31  ;;  %v56_v42 = vsel %vm54_vm7, %v51_v34, %v53_v38 }
  0x89   : > { %731 = vmatprep.mubr.f32.mxu0 %v1059_v4  ;;  %v60_v49 = vsel %vm44_vm9, %v56_v42, 0.0 }
  0x8b   : > { %v646_v37 = vpop.permute.xlu0 %645  ;;  %v67_v43 = vpop.permute.xlu1 %66 }
  0x8c   : > { %v72_v44 = vsel %vm70_vm8, %v67_v43, %v69_v33  ;;  %v71_v45 = vsel %vm70_vm8, %v65_v35, %v67_v43 }
  0x8d   : > { %972 = vmatprep.subr.msk.mxu1 %vm77_vm0, %v72_v44 }
  0x8e   : > { %973 = vmatpush1.msk.msra.mxu1 %vm77_vm0, %v71_v45 }
  0x8f   : > { %v49_v41 = vpop.permute.xlu0 %48  ;;  %975 = vmatprep.subr.msk.mxu1 %vm77_vm0, %v60_v49  ;;  %v648_v51 = vpop.permute.xlu1 %647  ;;  %974 = vmatmul.mubr.msk.f32.vlgmr.msra.gmra.mrb[0].mxu1 %vm73_vm1, %v971_v47 }
  0x90   : > { %v55_v46 = vsel %vm54_vm7, %v49_v41, %v51_v34  ;;  %v651_v52 = vsel %vm649_vm11, %v646_v37, %v648_v51  ;;  %226 = vmatprep.mubr.f32.mxu1 %v1059_v4 }
  0x91   : > { %v59_v50 = vsel %vm43_vm10, %v55_v46, 0.0  ;;  %v655_v53 = vsel %vm44_vm9, %v651_v52, 0.0 }
  0x92   : > { %976 = vmatpush1.msk.msra.mxu1 %vm77_vm0, %v59_v50  ;;  %996 = vmatprep.subr.msk.mxu0 %vm77_vm0, %v655_v53 }
  0x93   : > { %v255_v48 = vpop.permute.xlu0 %254  ;;  %v644_v55 = vpop.permute.xlu1 %643 }
  0x94   : > { %v650_v56 = vsel %vm649_vm11, %v644_v55, %v646_v37 }
  0x95   : > { %v654_v59 = vsel %vm43_vm10, %v650_v56, 0.0 }
  0x96   : > { %997 = vmatpush1.msk.msra.mxu0 %vm77_vm0, %v654_v59 }
  0x97   : > { %v253_v54 = vpop.permute.xlu0 %252  ;;  %v257_v62 = vpop.permute.xlu1 %256  ;;  %977 = vmatmul.mubr.msk.f32.vlgmr.msra.gmra.mrb[0].mxu1 %vm73_vm1, %v61_v57  ;;  %998 = vmatmul.mubr.msk.f32.vlgmr.msra.gmra.mrb[0].mxu0 %vm73_vm1, %v995_v58 }
  0x98   : > { %v259_v60 = vsel %vm258_vm12, %v253_v54, %v255_v48  ;;  %v260_v0 = vsel %vm258_vm12, %v255_v48, %v257_v62  ;;  %340 = vmatprep.mubr.f32.mxu1 %v1059_v4  ;;  %827 = vmatprep.mubr.f32.mxu0 %v1059_v4 }
  0x99   : > { %v263_v63 = vsel %vm247_vm4, %v259_v60, 0.0  ;;  %v264_v1 = vsel %vm248_vm5, %v260_v0, 0.0 }
  0x9a   : > { %980 = vmatprep.subr.msk.mxu1 %vm77_vm0, %v264_v1 }
  0x9b   : > { %v752_v61 = vpop.permute.xlu0 %751  ;;  %981 = vmatpush1.msk.msra.mxu1 %vm77_vm0, %v263_v63  ;;  %v750_v3 = vpop.permute.xlu1 %749 }
  0x9c   : > { %v755_v5 = vsel %vm753_vm13, %v750_v3, %v752_v61 }
  0x9d   : > { %1000 = vmatprep.subr.msk.mxu0 %vm77_vm0, %v755_v5 }
  0x9f   : > { %v357_v2 = vpop.permute.xlu0 %356  ;;  %v748_v8 = vpop.permute.xlu1 %747  ;;  %982 = vmatmul.mubr.msk.f32.vlgmr.msra.gmra.mrb[0].mxu1 %vm73_vm1, %v979_v6 }
  0xa0   : > { %v754_v10 = vsel %vm753_vm13, %v748_v8, %v750_v3  ;;  %442 = vmatprep.mubr.f32.mxu1 %v1059_v4 }
  0xa1   : > { %1001 = vmatpush1.msk.msra.mxu0 %vm77_vm0, %v754_v10 }
  0xa2   : > { %1002 = vmatmul.mubr.msk.f32.vlgmr.msra.gmra.mrb[0].mxu0 %vm73_vm1, %v999_v9 }
  0xa3   : > { %v844_v7 = vpop.permute.xlu0 %843  ;;  %v359_v13 = vpop.permute.xlu1 %358  ;;  %929 = vmatprep.mubr.f32.mxu0 %v1059_v4 }
  0xa4   : > { %v362_v14 = vsel %vm360_vm14, %v357_v2, %v359_v13 }
  0xa5   : > { %v366_v16 = vsel %vm44_vm9, %v362_v14, 0.0 }
  0xa6   : > { %984 = vmatprep.subr.msk.mxu1 %vm77_vm0, %v366_v16 }
  0xa7   : > { %v355_v11 = vpop.permute.xlu0 %354  ;;  %v846_v18 = vpop.permute.xlu1 %845 }
  0xa8   : > { %v361_v12 = vsel %vm360_vm14, %v355_v11, %v357_v2  ;;  %v849_v19 = vsel %vm847_vm15, %v844_v7, %v846_v18 }
  0xa9   : > { %v365_v15 = vsel %vm43_vm10, %v361_v12, 0.0  ;;  %v853_v4 = vsel %vm248_vm5, %v849_v19, 0.0 }
  0xaa   : > { %985 = vmatpush1.msk.msra.mxu1 %vm77_vm0, %v365_v15  ;;  %1004 = vmatprep.subr.msk.mxu0 %vm77_vm0, %v853_v4 }
  0xab   : > { %986 = vmatmul.mubr.msk.f32.vlgmr.msra.gmra.mrb[0].mxu1 %vm73_vm1, %v983_v17  ;;  %v842_v20 = vpop.permute.xlu1 %841 }
  0xac   : > { %v848_v21 = vsel %vm847_vm15, %v842_v20, %v844_v7 }
  0xad   : > { %v852_v25 = vsel %vm247_vm4, %v848_v21, 0.0 }
  0xae   : > { %1005 = vmatpush1.msk.msra.mxu0 %vm77_vm0, %v852_v25 }
  0xaf   : > { %1006 = vmatmul.mubr.msk.f32.vlgmr.msra.gmra.mrb[0].mxu0 %vm73_vm1, %v1003_v22 }
  0xb8   : > { %v942_v28 = vpop.permute.xlu0 %941 }
 0x17e   : > { %v444_v26 = vpop.f32.mrb[0].mxu1 }
 0x17f   : > { %v446_v27 = vpop.f32.mrb[1].mxu1 }
 0x182   : > { %v931_v24 = vpop.f32.mrb[0].mxu0 }
 0x183   : > { %v1010_v29 = vadd.f32 %v931_v24, %v444_v26  ;;  %v933_v30 = vpop.f32.mrb[1].mxu0 }
 0x184   : > { %v1011_v31 = vadd.f32 %v933_v30, %v446_v27 }
 0x185   : > { %v944_v32 = vadd.f32 %v1010_v29, %v942_v28  ;;  %23 = sbr.rel (!%p21_p0) target bundleno = 2 (0x2), region = 54 }
 0x186   : > { %v945_v33 = vadd.f32 %v1011_v31, %v942_v28 }
 0x187   : > { %vm946_vm2 = vcmp.ge.f32.partialorder %v944_v32, 0.0  ;;  %v948_v23 = vmul.f32 0.2, %v944_v32 }
 0x188   : > { %vm947_vm3 = vcmp.ge.f32.partialorder %v945_v33, 0.0  ;;  %v949_v34 = vmul.f32 0.2, %v945_v33 }
 0x189   : > { %v950_v35 = vsel %vm946_vm2, %v944_v32, %v948_v23 }
 0x18a   : > { %v951_v36 = vsel %vm947_vm3, %v945_v33, %v949_v34  ;;  %954 = vst [vmem:[%s953_s30] sm:$0xff] %v950_v35 }
 0x18b   : > { %955 = vst [vmem:[%s953_s30 + $0x8] sm:$0xff] %v951_v36 }

</bundles_post_ra>
